<compile_context>
chip_gen: v5e
topology: v5e:2x2
jax: 0.10.0
libtpu: 0.0.40
codegen_flags: <defaults>
</compile_context>

<pallas_src>
import functools

import jax
import jax.numpy as jnp
from jax.experimental import pallas as pl
from jax.experimental.pallas import tpu as pltpu


def _round_up(x, m):
    return (x + m - 1) // m * m


def _projection_head_kernel(x_ref, w1_ref, scale_ref, shift_ref, w2_ref, b2_ref, o_ref):
    # First linear (no bias): (TM, Fin) @ (Fin, H) on the MXU, f32 accumulation.
    h = jnp.dot(x_ref[...], w1_ref[...], preferred_element_type=jnp.float32)
    # Folded BatchNorm1d (eval mode): per-feature scale + shift, then ReLU (VPU).
    h = h * scale_ref[...] + shift_ref[...]
    h = jnp.maximum(h, 0.0)
    # Second linear with bias: (TM, H) @ (H, Fout) + b.
    y = jnp.dot(h.astype(w2_ref.dtype), w2_ref[...],
                preferred_element_type=jnp.float32) + b2_ref[...]
    o_ref[...] = y.astype(o_ref.dtype)


@functools.partial(jax.jit, static_argnames=("eps", "block_m"))
def projection_head(x, w1, gamma, beta, running_mean, running_var, w2, b2,
                    *, eps=1e-5, block_m=128):
    """Fused SimCLR nonlinear projection head forward.

    x:  (B, Fin)            activations
    w1: (Fin, H)            first linear weight (already transposed to in x out)
    gamma/beta/running_mean/running_var: (H,)  BatchNorm1d parameters/stats
    w2: (H, Fout)           second linear weight (in x out)
    b2: (Fout,)             second linear bias
    """
    B, Fin = x.shape
    H = w1.shape[1]
    Fout = w2.shape[1]

    # Fold eval-mode BatchNorm into scale/shift (tiny, done once in the wrapper).
    scale = (gamma / jnp.sqrt(running_var + eps)).astype(jnp.float32).reshape(1, H)
    shift = (beta - running_mean * gamma / jnp.sqrt(running_var + eps)
             ).astype(jnp.float32).reshape(1, H)
    b2_2d = b2.astype(jnp.float32).reshape(1, Fout)

    # Tile over batch rows only (weights are small enough to keep resident in
    # VMEM as full-extent blocks). Rows padded to a sublane-friendly multiple.
    tm = min(block_m, _round_up(B, 8))
    Bp = _round_up(B, tm)
    if Bp != B:
        x = jnp.pad(x, ((0, Bp - B), (0, 0)))

    out = pl.pallas_call(
        _projection_head_kernel,
        out_shape=jax.ShapeDtypeStruct((Bp, Fout), x.dtype),
        grid=(Bp // tm,),
        in_specs=[
            pl.BlockSpec((tm, Fin), lambda i: (i, 0)),   # x tile
            pl.BlockSpec((Fin, H), lambda i: (0, 0)),    # W1 (resident)
            pl.BlockSpec((1, H), lambda i: (0, 0)),      # BN scale
            pl.BlockSpec((1, H), lambda i: (0, 0)),      # BN shift
            pl.BlockSpec((H, Fout), lambda i: (0, 0)),   # W2 (resident)
            pl.BlockSpec((1, Fout), lambda i: (0, 0)),   # bias2
        ],
        out_specs=pl.BlockSpec((tm, Fout), lambda i: (i, 0)),
        compiler_params=pltpu.CompilerParams(
            dimension_semantics=("parallel",)),          # shard rows across TCs (v7x)
    )(x, w1, scale, shift, w2, b2_2d)

    return out[:B]


def _reference_forward(x, w1, gamma, beta, mean, var, w2, b2, eps=1e-5):
    h = x @ w1
    h = (h - mean) / jnp.sqrt(var + eps) * gamma + beta
    h = jnp.maximum(h, 0.0)
    return h @ w2 + b2


if __name__ == "__main__":
    key = jax.random.PRNGKey(0)
    B, Fin, H, Fout = 6, 128, 128, 64   # small shapes; B=6 exercises row padding

    ks = jax.random.split(key, 8)
    x = jax.random.normal(ks[0], (B, Fin), dtype=jnp.float32)
    w1 = jax.random.normal(ks[1], (Fin, H), dtype=jnp.float32) * 0.05
    gamma = jax.random.normal(ks[2], (H,), dtype=jnp.float32) * 0.1 + 1.0
    beta = jax.random.normal(ks[3], (H,), dtype=jnp.float32) * 0.1
    running_mean = jax.random.normal(ks[4], (H,), dtype=jnp.float32) * 0.1
    running_var = jax.nn.softplus(jax.random.normal(ks[5], (H,), dtype=jnp.float32)) + 0.5
    w2 = jax.random.normal(ks[6], (H, Fout), dtype=jnp.float32) * 0.05
    b2 = jax.random.normal(ks[7], (Fout,), dtype=jnp.float32) * 0.1

    y = projection_head(x, w1, gamma, beta, running_mean, running_var, w2, b2)
    jax.block_until_ready(y)

    y_ref = _reference_forward(x, w1, gamma, beta, running_mean, running_var, w2, b2)
    assert y.shape == (B, Fout) and y.dtype == x.dtype
    assert jnp.allclose(y, y_ref, rtol=1e-5, atol=1e-5), (
        f"max abs err = {jnp.max(jnp.abs(y - y_ref))}")
    print("KERNEL_OK")
</pallas_src>

<mosaic_0001>
module attributes {stable_mosaic.version = 11 : i64} {
  func.func @_projection_head_kernel(%arg0: i32, %arg1: memref<8x128xf32, #tpu.memory_space<vmem>>, %arg2: memref<128x128xf32, #tpu.memory_space<vmem>>, %arg3: memref<1x128xf32, #tpu.memory_space<vmem>>, %arg4: memref<1x128xf32, #tpu.memory_space<vmem>>, %arg5: memref<128x64xf32, #tpu.memory_space<vmem>>, %arg6: memref<1x64xf32, #tpu.memory_space<vmem>>, %arg7: memref<8x64xf32, #tpu.memory_space<vmem>>) attributes {dimension_semantics = [#tpu.dimension_semantics<parallel>], iteration_bounds = array<i64: 1>, scalar_prefetch = 0 : i64, scratch_operands = 0 : i64, tpu.core_type = #tpu.core_type<tc>, window_params = [{transform_indices = @transform_0, window_bounds = array<i64: 8, 128>}, {pipeline_mode = #tpu.pipeline_mode<synchronous>, transform_indices = @transform_1, window_bounds = array<i64: 128, 128>}, {pipeline_mode = #tpu.pipeline_mode<synchronous>, transform_indices = @transform_2, window_bounds = array<i64: 1, 128>}, {pipeline_mode = #tpu.pipeline_mode<synchronous>, transform_indices = @transform_3, window_bounds = array<i64: 1, 128>}, {pipeline_mode = #tpu.pipeline_mode<synchronous>, transform_indices = @transform_4, window_bounds = array<i64: 128, 64>}, {pipeline_mode = #tpu.pipeline_mode<synchronous>, transform_indices = @transform_5, window_bounds = array<i64: 1, 64>}, {transform_indices = @transform_6, window_bounds = array<i64: 8, 64>}]} {
    %c0 = arith.constant 0 : index
    %c0_0 = arith.constant 0 : index
    %0 = vector.load %arg1[%c0, %c0_0] : memref<8x128xf32, #tpu.memory_space<vmem>>, vector<8x128xf32>
    %c0_1 = arith.constant 0 : index
    %c0_2 = arith.constant 0 : index
    %1 = vector.load %arg2[%c0_1, %c0_2] : memref<128x128xf32, #tpu.memory_space<vmem>>, vector<128x128xf32>
    %cst = arith.constant dense<0.000000e+00> : vector<8x128xf32>
    %2 = tpu.matmul %0, %1, %cst {dimension_numbers = #tpu.dot_dimension_numbers<[1], [0], [0], [1], [0, 0, 1, 1], [], []>} : vector<8x128xf32>, vector<128x128xf32>, vector<8x128xf32> -> vector<8x128xf32>
    %c0_3 = arith.constant 0 : index
    %c0_4 = arith.constant 0 : index
    %3 = vector.load %arg3[%c0_3, %c0_4] : memref<1x128xf32, #tpu.memory_space<vmem>>, vector<1x128xf32>
    %4 = vector.broadcast %3 : vector<1x128xf32> to vector<8x128xf32>
    %5 = arith.mulf %2, %4 : vector<8x128xf32>
    %c0_5 = arith.constant 0 : index
    %c0_6 = arith.constant 0 : index
    %6 = vector.load %arg4[%c0_5, %c0_6] : memref<1x128xf32, #tpu.memory_space<vmem>>, vector<1x128xf32>
    %7 = vector.broadcast %6 : vector<1x128xf32> to vector<8x128xf32>
    %8 = arith.addf %5, %7 : vector<8x128xf32>
    %cst_7 = arith.constant 0.000000e+00 : f32
    %9 = vector.broadcast %cst_7 : f32 to vector<8x128xf32>
    %10 = arith.maximumf %8, %9 : vector<8x128xf32>
    %c0_8 = arith.constant 0 : index
    %c0_9 = arith.constant 0 : index
    %11 = vector.load %arg5[%c0_8, %c0_9] : memref<128x64xf32, #tpu.memory_space<vmem>>, vector<128x64xf32>
    %cst_10 = arith.constant dense<0.000000e+00> : vector<8x64xf32>
    %12 = tpu.matmul %10, %11, %cst_10 {dimension_numbers = #tpu.dot_dimension_numbers<[1], [0], [0], [1], [0, 0, 1, 1], [], []>} : vector<8x128xf32>, vector<128x64xf32>, vector<8x64xf32> -> vector<8x64xf32>
    %c0_11 = arith.constant 0 : index
    %c0_12 = arith.constant 0 : index
    %13 = vector.load %arg6[%c0_11, %c0_12] : memref<1x64xf32, #tpu.memory_space<vmem>>, vector<1x64xf32>
    %14 = vector.broadcast %13 : vector<1x64xf32> to vector<8x64xf32>
    %15 = arith.addf %12, %14 : vector<8x64xf32>
    %c0_13 = arith.constant 0 : index
    %c0_14 = arith.constant 0 : index
    %16 = vector.load %arg7[%c0_13, %c0_14] : memref<8x64xf32, #tpu.memory_space<vmem>>, vector<8x64xf32>
    tpu.vector_store %arg7[%c0_13, %c0_14], %15 {strides = array<i32>} : memref<8x64xf32, #tpu.memory_space<vmem>>, vector<8x64xf32>,
    return
  }
  func.func @transform_0(%arg0: i32) -> (i32, i32) {
    %c0_i32 = arith.constant 0 : i32
    %c0_i32_0 = arith.constant 0 : i32
    return %arg0, %c0_i32 : i32, i32
  }
  func.func @transform_1(%arg0: i32) -> (i32, i32) {
    %c0_i32 = arith.constant 0 : i32
    %c0_i32_0 = arith.constant 0 : i32
    %c0_i32_1 = arith.constant 0 : i32
    return %c0_i32, %c0_i32_0 : i32, i32
  }
  func.func @transform_2(%arg0: i32) -> (i32, i32) {
    %c0_i32 = arith.constant 0 : i32
    %c0_i32_0 = arith.constant 0 : i32
    %c0_i32_1 = arith.constant 0 : i32
    return %c0_i32, %c0_i32_0 : i32, i32
  }
  func.func @transform_3(%arg0: i32) -> (i32, i32) {
    %c0_i32 = arith.constant 0 : i32
    %c0_i32_0 = arith.constant 0 : i32
    %c0_i32_1 = arith.constant 0 : i32
    return %c0_i32, %c0_i32_0 : i32, i32
  }
  func.func @transform_4(%arg0: i32) -> (i32, i32) {
    %c0_i32 = arith.constant 0 : i32
    %c0_i32_0 = arith.constant 0 : i32
    %c0_i32_1 = arith.constant 0 : i32
    return %c0_i32, %c0_i32_0 : i32, i32
  }
  func.func @transform_5(%arg0: i32) -> (i32, i32) {
    %c0_i32 = arith.constant 0 : i32
    %c0_i32_0 = arith.constant 0 : i32
    %c0_i32_1 = arith.constant 0 : i32
    return %c0_i32, %c0_i32_0 : i32, i32
  }
  func.func @transform_6(%arg0: i32) -> (i32, i32) {
    %c0_i32 = arith.constant 0 : i32
    %c0_i32_0 = arith.constant 0 : i32
    return %arg0, %c0_i32 : i32, i32
  }
}

</mosaic_0001>

<bundles_post_ra>
// kernel: projection_head.1
= control target key start
LH: loop header
LB: loop body
LE: loop exit
PB: predicated region body
PF: predicated region fallthrough
CT: control target
= control target key end

     0   :  { %s307_s0 = inlined_call_operand.vmem [shape: f32[8,128], index: 0, kind: input, shape index: {}]   ;;  %s308_s1 = inlined_call_operand.vmem [shape: f32[128,128], index: 1, kind: input, shape index: {}]   ;;  %s309_s2 = inlined_call_operand.vmem [shape: f32[1,128], index: 2, kind: input, shape index: {}]   ;;  %s310_s3 = inlined_call_operand.vmem [shape: f32[1,128], index: 3, kind: input, shape index: {}]   ;;  %s311_s4 = inlined_call_operand.vmem [shape: f32[128,64], index: 4, kind: input, shape index: {}]   ;;  %s312_s5 = inlined_call_operand.vmem [shape: f32[1,64], index: 5, kind: input, shape index: {}]   ;;  %s313_s6 = inlined_call_operand.hbm [shape: f32[8,64], index: 6, kind: output, shape index: {}]  }
   0x1   :  { %v40_v0 = vld [vmem:[%s308_s1 + $0x78] sm:$0xff]  ;;  %v39_v1 = vld [vmem:[%s308_s1 + $0x70] sm:$0xff]  ;;  %v38_v2 = vld [vmem:[%s308_s1 + $0x68] sm:$0xff] }
   0x2   :  { %41 = vmatpush.msra.mxu0 %v40_v0  ;;  %v37_v3 = vld [vmem:[%s308_s1 + $0x60] sm:$0xff]  ;;  %v87_v4 = vld [vmem:[%s311_s4 + $0x78] sm:$0xff]  ;;  %v86_v6 = vld [vmem:[%s311_s4 + $0x70] sm:$0xff] }
   0x3   :  { %v36_v5 = vld [vmem:[%s308_s1 + $0x58] sm:$0xff]  ;;  %92 = vmatpush.msra.mxu1 %v87_v4  ;;  %v85_v7 = vld [vmem:[%s311_s4 + $0x68] sm:$0xff]  ;;  %v35_v8 = vld [vmem:[%s308_s1 + $0x50] sm:$0xff] }
   0x4   :  { %42 = vmatpush.msra.mxu0 %v39_v1  ;;  %v34_v9 = vld [vmem:[%s308_s1 + $0x48] sm:$0xff]  ;;  %v84_v10 = vld [vmem:[%s311_s4 + $0x60] sm:$0xff] }
   0x5   :  { %93 = vmatpush.msra.mxu1 %v86_v6 }
   0x6   :  { %43 = vmatpush.msra.mxu0 %v38_v2 }
   0x7   :  { %94 = vmatpush.msra.mxu1 %v85_v7 }
   0x8   :  { %44 = vmatpush.msra.mxu0 %v37_v3 }
   0xa   :  { %45 = vmatpush.msra.mxu0 %v36_v5 }
   0xb   :  { %11 = vsyncpa [#allocation3], 0  ;;  %v83_v11 = vld [vmem:[%s311_s4 + $0x58] sm:$0xff]  ;;  %v33_v12 = vld [vmem:[%s308_s1 + $0x40] sm:$0xff]  ;;  %95 = vmatpush.msra.mxu1 %v84_v10  ;;  %s121_s22 = sshll.u32 %s313_s6, 4  ;;  %vm112_vm0 = vcmask 523264   ;;  %s122_s22 = int_to_ptr.hbm [resolvable:$true] %s121_s22 }
   0xc   :  { %46 = vmatpush.msra.mxu0 %v35_v8  ;;  %v82_v13 = vld [vmem:[%s311_s4 + $0x50] sm:$0xff]  ;;  %v32_v14 = vld [vmem:[%s308_s1 + $0x38] sm:$0xff]  ;;  %v81_v15 = vld [vmem:[%s311_s4 + $0x48] sm:$0xff] }
   0xd   :  { %96 = vmatpush.msra.mxu1 %v83_v11  ;;  %v31_v16 = vld [vmem:[%s308_s1 + $0x30] sm:$0xff]  ;;  %v80_v17 = vld [vmem:[%s311_s4 + $0x40] sm:$0xff]  ;;  %v30_v18 = vld [vmem:[%s308_s1 + $0x28] sm:$0xff] }
   0xe   :  { %47 = vmatpush.msra.mxu0 %v34_v9  ;;  %v79_v19 = vld [vmem:[%s311_s4 + $0x38] sm:$0xff]  ;;  %v29_v20 = vld [vmem:[%s308_s1 + $0x20] sm:$0xff]  ;;  %v78_v21 = vld [vmem:[%s311_s4 + $0x30] sm:$0xff] }
   0xf   :  { %97 = vmatpush.msra.mxu1 %v82_v13  ;;  %v28_v22 = vld [vmem:[%s308_s1 + $0x18] sm:$0xff]  ;;  %v77_v23 = vld [vmem:[%s311_s4 + $0x28] sm:$0xff]  ;;  %v27_v24 = vld [vmem:[%s308_s1 + $0x10] sm:$0xff] }
  0x10   :  { %48 = vmatpush.msra.mxu0 %v33_v12  ;;  %v76_v25 = vld [vmem:[%s311_s4 + $0x20] sm:$0xff]  ;;  %v26_v26 = vld [vmem:[%s308_s1 + $0x8] sm:$0xff]  ;;  %v75_v29 = vld [vmem:[%s311_s4 + $0x18] sm:$0xff] }
  0x11   :  { %98 = vmatpush.msra.mxu1 %v81_v15  ;;  %v25_v27 = vld [vmem:[%s308_s1] sm:$0xff]  ;;  %v74_v30 = vld [vmem:[%s311_s4 + $0x10] sm:$0xff]  ;;  %v73_v31 = vld [vmem:[%s311_s4 + $0x8] sm:$0xff] }
  0x12   :  { %49 = vmatpush.msra.mxu0 %v32_v14  ;;  %v24_v28 = vld [vmem:[%s307_s0] sm:$0xff] }
  0x13   :  { %99 = vmatpush.msra.mxu1 %v80_v17  ;;  %v72_v32 = vld [vmem:[%s311_s4] sm:$0xff]  ;;  %s160_s4 = smov [#allocation2]  }
  0x14   :  { %50 = vmatpush.msra.mxu0 %v31_v16  ;;  %v131_v33 = vld [vmem:[%s309_s2] ss:$0 sm:$0xff]  ;;  %s119_s19 = sshll.u32 %s160_s4, 4  ;;  %s120_s19 = int_to_ptr.vmem [resolvable:$true] %s119_s19 }
  0x15   :  { %100 = vmatpush.msra.mxu1 %v79_v19  ;;  %v132_v34 = vld [vmem:[%s310_s3] ss:$0 sm:$0xff] }
  0x16   :  { %51 = vmatpush.msra.mxu0 %v30_v18  ;;  %v133_v39 = vld [vmem:[%s312_s5] ss:$0 sm:$0xff] }
  0x17   :  { %101 = vmatpush.msra.mxu1 %v78_v21 }
  0x18   :  { %52 = vmatpush.msra.mxu0 %v29_v20 }
  0x19   :  { %102 = vmatpush.msra.mxu1 %v77_v23 }
  0x1a   :  { %53 = vmatpush.msra.mxu0 %v28_v22 }
  0x1b   :  { %103 = vmatpush.msra.mxu1 %v76_v25 }
  0x1c   :  { %54 = vmatpush.msra.mxu0 %v27_v24 }
  0x1d   :  { %104 = vmatpush.msra.mxu1 %v75_v29 }
  0x1e   :  { %55 = vmatpush.msra.mxu0 %v26_v26 }
  0x1f   :  { %105 = vmatpush.msra.mxu1 %v74_v30 }
  0x20   :  { %56 = vmatpush.msra.mxu0 %v25_v27 }
  0x21   :  { %57 = vmatmul.f32.vlgmr.msra.gmra.mxu0 %v24_v28  ;;  %106 = vmatpush.msra.mxu1 %v73_v31 }
  0x23   :  { %107 = vmatpush.msra.mxu1 %v72_v32 }
  0x9e   :  { %v58_v35 = vpop.f32.mrf.mxu0 }
  0x9f   :  { %v65_v36 = vmul.f32 %v131_v33, %v58_v35 }
  0xa1   :  { %v70_v37 = vadd.f32 %v132_v34, %v65_v36 }
  0xa3   :  { %v71_v38 = vmax.f32 %v70_v37, 0.0 }
  0xa5   :  { %108 = vmatmul.f32.vlgmr.msra.gmra.mxu1 %v71_v38 }
 0x122   :  { %v109_v40 = vpop.f32.mrf.mxu1 }
 0x123   :  { %v110_v41 = vadd.f32 %v133_v39, %v109_v40 }
 0x125   :  { %113 = vst.msk [vmem:[#allocation2] sm:$0xff] %vm112_vm0, %v110_v41 }
 0x126   :  { %124 = dma.vmem_to_hbm [thread:$0]  %s120_s19, 128, %s122_s22, [#allocation3]  }
 0x127   :  { %158 = dma.done.wait [#allocation3], 128  }
 0x128   :  { %159 = vsyncadd [#allocation3], 4294967168 }
 0x129   :  { %129 = vsyncpa [#allocation3], 1 }

</bundles_post_ra>
